<compile_context>
chip_gen: v7x
topology: tpu7x:2x2x1
jax: 0.10.0
libtpu: 0.0.40
codegen_flags: <defaults>
</compile_context>

<pallas_src>
import functools

import jax
import jax.numpy as jnp
from jax.experimental import pallas as pl
from jax.experimental.pallas import tpu as pltpu


def _make_focal_loss_kernel(gamma, size_average, n_rows, block_rows):
    """Builds the kernel body.  gamma / size_average / shapes are trace-time."""
    gamma_f = float(gamma)
    # Integer-gamma fast path (default gamma=2): repeated multiply on the VPU
    # instead of exp(g*log(x)) on the single EUP port.
    if gamma_f == int(gamma_f) and 0 <= int(gamma_f) <= 8:
        gamma_int = int(gamma_f)
    else:
        gamma_int = None

    def kernel(x_ref, t_ref, a_ref, o_ref, acc_ref):
        i = pl.program_id(0)

        @pl.when(i == 0)
        def _init():
            acc_ref[...] = jnp.zeros_like(acc_ref)

        x = x_ref[...].astype(jnp.float32)      # (TN, C) logits (bf16 ok)
        t = t_ref[...]                          # (TN, 1) int32 class ids
        a = a_ref[...].astype(jnp.float32)      # (1,  C) per-class alpha

        # --- log-sum-exp gather of log p_t (no full softmax materialized) ---
        m = jnp.max(x, axis=1, keepdims=True)                           # (TN,1)
        lse = jnp.log(jnp.sum(jnp.exp(x - m), axis=1, keepdims=True))   # (TN,1)

        cols = jax.lax.broadcasted_iota(jnp.int32, x.shape, 1)          # (TN,C)
        mask = (cols == t).astype(jnp.float32)                          # one-hot

        x_t = jnp.sum(x * mask, axis=1, keepdims=True)                  # (TN,1)
        alpha_t = jnp.sum(a * mask, axis=1, keepdims=True)              # (TN,1)

        log_p = x_t - m - lse                                           # log p_t
        probs = jnp.exp(log_p)                                          # p_t
        one_minus = 1.0 - probs

        if gamma_int is not None:
            focal = jnp.ones_like(one_minus)
            for _ in range(gamma_int):
                focal = focal * one_minus
        else:
            focal = jnp.power(one_minus, jnp.float32(gamma_f))

        loss = -alpha_t * focal * log_p                                 # (TN,1)

        # Mask out padded rows of the last (partial) tile so they do not
        # contribute to the reduction (and so OOB garbage cannot leak in).
        row_ids = i * block_rows + jax.lax.broadcasted_iota(
            jnp.int32, loss.shape, 0)
        loss = jnp.where(row_ids < n_rows, loss, 0.0)

        acc_ref[...] += jnp.sum(loss, keepdims=True)

        @pl.when(i == pl.num_programs(0) - 1)
        def _finalize():
            total = acc_ref[...]
            if size_average:
                total = total / jnp.float32(n_rows)   # divide by TRUE N
            o_ref[...] = total

    return kernel


def _choose_block_rows(n, c, itemsize, requested):
    """Pick a row-tile size: large for pipelining, but keep the logits block
    around <= 8 MiB so 2x double buffering fits scoped VMEM on every chip."""
    cap = max(32, (8 * 1024 * 1024) // max(1, c * itemsize))
    cap = max(32, (cap // 32) * 32)          # multiple of 32 rows (any dtype)
    br = max(32, (min(requested, cap) // 32) * 32)
    if n <= br:
        return n                             # single full-extent block
    return br


def focal_loss(inputs, targets, alpha=None, gamma=2.0, size_average=True,
               block_rows=1024):
    """inputs: (N, C) logits (f32 or bf16); targets: (N,) int class ids;
    alpha: (C,) per-class weight or None."""
    inputs = jnp.asarray(inputs)             # keep dtype: bf16 stays bf16
    N, C = inputs.shape
    if alpha is None:
        alpha = jnp.ones((C,), dtype=jnp.float32)
    alpha = jnp.asarray(alpha, dtype=jnp.float32).reshape(1, C)
    targets2d = jnp.asarray(targets, dtype=jnp.int32).reshape(N, 1)

    tn = _choose_block_rows(N, C, jnp.dtype(inputs.dtype).itemsize, block_rows)
    num_tiles = pl.cdiv(N, tn)

    kernel = _make_focal_loss_kernel(gamma, size_average, N, tn)

    out = pl.pallas_call(
        kernel,
        out_shape=jax.ShapeDtypeStruct((1, 1), jnp.float32),
        grid=(num_tiles,),
        in_specs=[
            pl.BlockSpec((tn, C), lambda i: (i, 0)),    # logits tile
            pl.BlockSpec((tn, 1), lambda i: (i, 0)),    # targets tile
            pl.BlockSpec((1, C), lambda i: (0, 0)),     # alpha (resident)
        ],
        out_specs=pl.BlockSpec((1, 1), lambda i: (0, 0)),
        scratch_shapes=[pltpu.VMEM((1, 1), jnp.float32)],
        compiler_params=pltpu.CompilerParams(
            # Reduction over the batch axis into one accumulator -> arbitrary.
            # TODO(synk): on v7x, split N across the 2 TensorCores (per-core
            # partial sums) instead of a single serialized accumulator axis.
            dimension_semantics=("arbitrary",),
            vmem_limit_bytes=32 * 1024 * 1024,
        ),
    )(inputs, targets2d, alpha)
    return out[0, 0]


def focal_loss_ref(inputs, targets, alpha=None, gamma=2.0, size_average=True):
    """Pure-JAX reference mirroring the PyTorch forward exactly."""
    inputs = jnp.asarray(inputs, dtype=jnp.float32)
    N, C = inputs.shape
    if alpha is None:
        alpha = jnp.ones((C,), dtype=jnp.float32)
    p = jax.nn.softmax(inputs, axis=1)
    mask = jax.nn.one_hot(jnp.asarray(targets), C, dtype=jnp.float32)
    probs = jnp.sum(p * mask, axis=1, keepdims=True)
    a = jnp.asarray(alpha, jnp.float32)[jnp.asarray(targets)].reshape(-1, 1)
    log_p = jnp.log(probs)
    batch_loss = -a * jnp.power(1.0 - probs, gamma) * log_p
    return jnp.mean(batch_loss) if size_average else jnp.sum(batch_loss)


if __name__ == "__main__":
    key = jax.random.PRNGKey(0)
    k1, k2, k3, k4 = jax.random.split(key, 4)

    # --- Test 1: small batch, f32, mean reduction, per-class alpha ---------
    N, C = 8, 10
    logits = jax.random.normal(k1, (N, C), dtype=jnp.float32)
    targets = jax.random.randint(k2, (N,), 0, C, dtype=jnp.int32)
    alpha = jnp.linspace(0.5, 1.5, C, dtype=jnp.float32)

    loss = jax.block_until_ready(
        focal_loss(logits, targets, alpha=alpha, gamma=2.0, size_average=True))
    ref = focal_loss_ref(logits, targets, alpha=alpha, gamma=2.0,
                         size_average=True)
    assert jnp.allclose(loss, ref, rtol=1e-5, atol=1e-6), (loss, ref)

    # --- Test 2: tiled batch (partial last tile), sum reduction ------------
    N2 = 200
    logits2 = jax.random.normal(k3, (N2, C), dtype=jnp.float32)
    targets2 = jax.random.randint(k4, (N2,), 0, C, dtype=jnp.int32)
    loss2 = jax.block_until_ready(
        focal_loss(logits2, targets2, alpha=alpha, gamma=2.0,
                   size_average=False, block_rows=64))   # 4 tiles, last padded
    ref2 = focal_loss_ref(logits2, targets2, alpha=alpha, gamma=2.0,
                          size_average=False)
    assert jnp.allclose(loss2, ref2, rtol=1e-5, atol=1e-5), (loss2, ref2)

    # --- Test 3: bf16 logits stay bf16 through the DMA, gamma=3, alpha=None -
    logits_bf16 = logits.astype(jnp.bfloat16)
    loss3 = jax.block_until_ready(
        focal_loss(logits_bf16, targets, alpha=None, gamma=3, size_average=True))
    ref3 = focal_loss_ref(logits_bf16.astype(jnp.float32), targets, alpha=None,
                          gamma=3.0, size_average=True)
    assert jnp.allclose(loss3, ref3, rtol=1e-5, atol=1e-6), (loss3, ref3)

    print("KERNEL_OK")
</pallas_src>

<mosaic_0001>
module attributes {stable_mosaic.version = 11 : i64} {
  func.func @kernel(%arg0: i32, %arg1: memref<8x10xf32, #tpu.memory_space<vmem>>, %arg2: memref<8x1xi32, #tpu.memory_space<vmem>>, %arg3: memref<1x10xf32, #tpu.memory_space<vmem>>, %arg4: memref<1x1xf32, #tpu.memory_space<vmem>>, %arg5: memref<1x1xf32, #tpu.memory_space<vmem>>) attributes {dimension_semantics = [#tpu.dimension_semantics<arbitrary>], iteration_bounds = array<i64: 1>, scalar_prefetch = 0 : i64, scratch_operands = 1 : i64, tpu.core_type = #tpu.core_type<tc>, window_params = [{transform_indices = @transform_0, window_bounds = array<i64: 8, 10>}, {transform_indices = @transform_1, window_bounds = array<i64: 8, 1>}, {pipeline_mode = #tpu.pipeline_mode<synchronous>, transform_indices = @transform_2, window_bounds = array<i64: 1, 10>}, {pipeline_mode = #tpu.pipeline_mode<synchronous>, transform_indices = @transform_3, window_bounds = array<i64: 1, 1>}]} {
    %c0_i32 = arith.constant 0 : i32
    %0 = arith.cmpi eq, %arg0, %c0_i32 : i32
    %1 = arith.extui %0 : i1 to i32
    %c0_i32_0 = arith.constant 0 : i32
    %2 = arith.cmpi ne, %1, %c0_i32_0 : i32
    scf.if %2 {
      %cst_21 = arith.constant 0.000000e+00 : f32
      %57 = vector.broadcast %cst_21 : f32 to vector<1x1xf32>
      %c0_22 = arith.constant 0 : index
      %c0_23 = arith.constant 0 : index
      %58 = vector.load %arg5[%c0_22, %c0_23] : memref<1x1xf32, #tpu.memory_space<vmem>>, vector<1x1xf32>
      tpu.vector_store %arg5[%c0_22, %c0_23], %57 {strides = array<i32>} : memref<1x1xf32, #tpu.memory_space<vmem>>, vector<1x1xf32>,
    } else {
    }
    %c0 = arith.constant 0 : index
    %c0_1 = arith.constant 0 : index
    %3 = vector.load %arg1[%c0, %c0_1] : memref<8x10xf32, #tpu.memory_space<vmem>>, vector<8x10xf32>
    %c0_2 = arith.constant 0 : index
    %c0_3 = arith.constant 0 : index
    %4 = vector.load %arg2[%c0_2, %c0_3] : memref<8x1xi32, #tpu.memory_space<vmem>>, vector<8x1xi32>
    %c0_4 = arith.constant 0 : index
    %c0_5 = arith.constant 0 : index
    %5 = vector.load %arg3[%c0_4, %c0_5] : memref<1x10xf32, #tpu.memory_space<vmem>>, vector<1x10xf32>
    %cst = arith.constant dense<0xFF800000> : vector<8xf32>
    %6 = vector.multi_reduction <maximumf>, %3, %cst [1] : vector<8x10xf32> to vector<8xf32>
    %7 = vector.shape_cast %6 : vector<8xf32> to vector<8x1xf32>
    %8 = vector.broadcast %7 : vector<8x1xf32> to vector<8x10xf32>
    %9 = arith.subf %3, %8 : vector<8x10xf32>
    %10 = math.exp %9 : vector<8x10xf32>
    %cst_6 = arith.constant dense<0.000000e+00> : vector<8xf32>
    %11 = vector.multi_reduction <add>, %10, %cst_6 [1] : vector<8x10xf32> to vector<8xf32>
    %12 = vector.shape_cast %11 : vector<8xf32> to vector<8x1xf32>
    %13 = math.log %12 : vector<8x1xf32>
    %14 = tpu.iota {dimensions = array<i32: 1>} : vector<8x10xi32>
    %15 = vector.broadcast %4 : vector<8x1xi32> to vector<8x10xi32>
    %16 = arith.cmpi eq, %14, %15 : vector<8x10xi32>
    %17 = arith.extui %16 : vector<8x10xi1> to vector<8x10xi32>
    %18 = arith.sitofp %17 : vector<8x10xi32> to vector<8x10xf32>
    %19 = arith.mulf %3, %18 : vector<8x10xf32>
    %cst_7 = arith.constant dense<0.000000e+00> : vector<8xf32>
    %20 = vector.multi_reduction <add>, %19, %cst_7 [1] : vector<8x10xf32> to vector<8xf32>
    %21 = vector.shape_cast %20 : vector<8xf32> to vector<8x1xf32>
    %22 = vector.broadcast %5 : vector<1x10xf32> to vector<8x10xf32>
    %23 = arith.mulf %22, %18 : vector<8x10xf32>
    %cst_8 = arith.constant dense<0.000000e+00> : vector<8xf32>
    %24 = vector.multi_reduction <add>, %23, %cst_8 [1] : vector<8x10xf32> to vector<8xf32>
    %25 = vector.shape_cast %24 : vector<8xf32> to vector<8x1xf32>
    %26 = arith.subf %21, %7 : vector<8x1xf32>
    %27 = arith.subf %26, %13 : vector<8x1xf32>
    %28 = math.exp %27 : vector<8x1xf32>
    %cst_9 = arith.constant 1.000000e+00 : f32
    %29 = vector.broadcast %cst_9 : f32 to vector<8x1xf32>
    %30 = arith.subf %29, %28 : vector<8x1xf32>
    %cst_10 = arith.constant 1.000000e+00 : f32
    %31 = vector.broadcast %cst_10 : f32 to vector<8x1xf32>
    %32 = arith.mulf %31, %30 : vector<8x1xf32>
    %33 = arith.mulf %32, %30 : vector<8x1xf32>
    %cst_11 = arith.constant 0.000000e+00 : f32
    %34 = vector.broadcast %cst_11 : f32 to vector<8x1xf32>
    %35 = arith.subf %34, %25 : vector<8x1xf32>
    %36 = arith.mulf %35, %33 : vector<8x1xf32>
    %37 = arith.mulf %36, %27 : vector<8x1xf32>
    %c8_i32 = arith.constant 8 : i32
    %38 = arith.muli %arg0, %c8_i32 : i32
    %39 = tpu.iota {dimensions = array<i32: 0>} : vector<8x1xi32>
    %40 = vector.broadcast %38 : i32 to vector<8x1xi32>
    %41 = arith.addi %40, %39 : vector<8x1xi32>
    %c8_i32_12 = arith.constant 8 : i32
    %42 = vector.broadcast %c8_i32_12 : i32 to vector<8x1xi32>
    %43 = arith.cmpi slt, %41, %42 : vector<8x1xi32>
    %cst_13 = arith.constant 0.000000e+00 : f32
    %44 = vector.broadcast %cst_13 : f32 to vector<8x1xf32>
    %45 = arith.select %43, %37, %44 : vector<8x1xi1>, vector<8x1xf32>
    %c0_14 = arith.constant 0 : index
    %c0_15 = arith.constant 0 : index
    %46 = vector.load %arg5[%c0_14, %c0_15] : memref<1x1xf32, #tpu.memory_space<vmem>>, vector<1x1xf32>
    %47 = vector.shape_cast %45 : vector<8x1xf32> to vector<1x8x1xf32>
    %cst_16 = arith.constant dense<0.000000e+00> : vector<1xf32>
    %48 = vector.multi_reduction <add>, %47, %cst_16 [1, 2] : vector<1x8x1xf32> to vector<1xf32>
    %49 = vector.shape_cast %48 : vector<1xf32> to vector<1x1x1xf32>
    %50 = vector.extract %49[0, 0, 0] : f32 from vector<1x1x1xf32>
    %51 = vector.broadcast %50 : f32 to vector<1x1xf32>
    %52 = arith.addf %46, %51 : vector<1x1xf32>
    %c0_17 = arith.constant 0 : index
    %c0_18 = arith.constant 0 : index
    %53 = vector.load %arg5[%c0_17, %c0_18] : memref<1x1xf32, #tpu.memory_space<vmem>>, vector<1x1xf32>
    tpu.vector_store %arg5[%c0_17, %c0_18], %52 {strides = array<i32>} : memref<1x1xf32, #tpu.memory_space<vmem>>, vector<1x1xf32>,
    %c0_i32_19 = arith.constant 0 : i32
    %54 = arith.cmpi eq, %arg0, %c0_i32_19 : i32
    %55 = arith.extui %54 : i1 to i32
    %c0_i32_20 = arith.constant 0 : i32
    %56 = arith.cmpi ne, %55, %c0_i32_20 : i32
    scf.if %56 {
      %c0_21 = arith.constant 0 : index
      %c0_22 = arith.constant 0 : index
      %57 = vector.load %arg5[%c0_21, %c0_22] : memref<1x1xf32, #tpu.memory_space<vmem>>, vector<1x1xf32>
      %cst_23 = arith.constant 8.000000e+00 : f32
      %58 = vector.broadcast %cst_23 : f32 to vector<1x1xf32>
      %59 = arith.divf %57, %58 : vector<1x1xf32>
      %c0_24 = arith.constant 0 : index
      %c0_25 = arith.constant 0 : index
      %60 = vector.load %arg4[%c0_24, %c0_25] : memref<1x1xf32, #tpu.memory_space<vmem>>, vector<1x1xf32>
      tpu.vector_store %arg4[%c0_24, %c0_25], %59 {strides = array<i32>} : memref<1x1xf32, #tpu.memory_space<vmem>>, vector<1x1xf32>,
    } else {
    }
    return
  }
  func.func @transform_0(%arg0: i32) -> (i32, i32) {
    %c0_i32 = arith.constant 0 : i32
    %c0_i32_0 = arith.constant 0 : i32
    return %arg0, %c0_i32 : i32, i32
  }
  func.func @transform_1(%arg0: i32) -> (i32, i32) {
    %c0_i32 = arith.constant 0 : i32
    %c0_i32_0 = arith.constant 0 : i32
    return %arg0, %c0_i32 : i32, i32
  }
  func.func @transform_2(%arg0: i32) -> (i32, i32) {
    %c0_i32 = arith.constant 0 : i32
    %c0_i32_0 = arith.constant 0 : i32
    %c0_i32_1 = arith.constant 0 : i32
    return %c0_i32, %c0_i32_0 : i32, i32
  }
  func.func @transform_3(%arg0: i32) -> (i32, i32) {
    %c0_i32 = arith.constant 0 : i32
    %c0_i32_0 = arith.constant 0 : i32
    %c0_i32_1 = arith.constant 0 : i32
    return %c0_i32, %c0_i32_0 : i32, i32
  }
}

</mosaic_0001>

<bundles_post_ra>
// kernel: tpu_custom_call.1
= control target key start
LH: loop header
LB: loop body
LE: loop exit
PB: predicated region body
PF: predicated region fallthrough
CT: control target
= control target key end

     0   :  { %vm24_vm0 = vcmask 80896   ;;  %s200_s0 = inlined_call_operand.vmem [shape: f32[8,10], index: 0, kind: input, shape index: {}]   ;;  %s201_s1 = inlined_call_operand.vmem [shape: s32[8,1], index: 1, kind: input, shape index: {}]   ;;  %s202_s2 = inlined_call_operand.vmem [shape: f32[1,10], index: 2, kind: input, shape index: {}]   ;;  %s203_s3 = inlined_call_operand.hbm [shape: f32[1,1], index: 3, kind: output, shape index: {}]  }
   0x1   :  { %v21_v0 = vld [vmem:[%s200_s0] sm:$0xff] }
   0x2   :  { %8 = vsyncpa [#allocation4], 0  ;;  %v25_v1 = vsel %vm24_vm0, %v21_v0, -inf  ;;  %v149_v2 = vmov 0   ;;  %v22_v3 = vld [vmem:[%s201_s1] sm:$0xff]  ;;  %vm19_vm1 = vcmask 0   ;;  %v36_v7 = vlaneseq }
   0x3   :  { %118 = vset.pattern.permute.xlu0 %v149_v2  ;;  %v150_v4 = vmov 0.0   ;;  %v112_v14 = vld [vmem:[%s202_s2] ss:$0 sm:$0xff]  ;;  %vm75_vm3 = vcmask 7168   ;;  %s151_s2 = smov [#allocation3]  }
   0x4   :  { %26 = vmax.xlane.f32.xlu0 %v25_v1  ;;  %20 = vst.msk [vmem:[#allocation2] sm:$0x1] %vm19_vm1, %v150_v4  ;;  %v37_v9 = vand.u32 127, %v36_v7  ;;  %s103_s17 = sshll.u32 %s151_s2, 4  ;;  %s104_s17 = int_to_ptr.vmem [resolvable:$true] %s103_s17 }
   0x5   :  { %s125_s18 = scalar_lea.vmem %s104_s17, 16  ;;  %s129_s19 = scalar_lea.vmem %s104_s17, 32 }
   0x6   :  { %p126_p0 = scmp.ne.s32.totalorder %s104_s17, %s125_s18  ;;  %p130_p1 = scmp.lt.s32.totalorder %s104_s17, %s104_s17 }
   0x7   :  { %p131_p2 = scmp.lt.s32.totalorder %s129_s19, %s125_s18 }
   0x9   :  { %p132_p3 = por %p131_p2, %p130_p1 }
   0xb   :  { %v74_v41 = vld [vmem:[#allocation2] sm:$0x1]  ;;  %p133_p4 = pnand %p132_p3, %p126_p0 }
  0x1a   :  { %39 = vperm.xlu0 %118, %v22_v3  }
  0x91   :  { %v27_v5 = vpop.xlane.xlu0 %26 }
  0x92   :  { %v28_v6 = vsub.f32 %v21_v0, %v27_v5 }
  0x94   :  { %v29_v8 = vmul.f32 1.442695, %v28_v6 }
  0x96   :  { %119 = vpow2.f32 %v29_v8 }
  0x99   :  { %v40_v10 = vpop.permute.xlu0 %39 }
  0x9a   :  { %vm41_vm2 = vcmp.eq.s32.totalorder %v37_v9, %v40_v10 }
  0x9b   :  { %v111_v11 = vsel %vm41_vm2, 1.0, %v150_v4 }
  0x9c   :  { %v44_v12 = vmul.f32 %v111_v11, %v21_v0  ;;  %v54_v17 = vmul.f32 %v112_v14, %v111_v11 }
  0x9e   :  { %v45_v16 = vsel %vm24_vm0, %v44_v12, 0.0  ;;  %v55_v18 = vsel %vm24_vm0, %v54_v17, 0.0 }
  0xa0   :  { %v120_v13 = vpop.eup %119 }
  0xa1   :  { %v31_v15 = vsel %vm24_vm0, %v120_v13, 0.0 }
  0xa2   :  { %32 = vadd.xlane.f32.xlu1 %v31_v15 }
  0xa6   :  { %46 = vadd.xlane.f32.xlu1 %v45_v16 }
  0xaa   :  { %56 = vadd.xlane.f32.xlu1 %v55_v18 }
 0x12f   :  { %v33_v19 = vpop.xlane.xlu1 %32 }
 0x130   :  { %121 = vlog2.f32 %v33_v19 }
 0x133   :  { %v47_v20 = vpop.xlane.xlu1 %46 }
 0x134   :  { %v58_v23 = vsub.f32 %v47_v20, %v27_v5 }
 0x137   :  { %v57_v27 = vpop.xlane.xlu1 %56 }
 0x138   :  { %v64_v30 = vsub.f32 0.0, %v57_v27 }
 0x13a   :  { %v122_v21 = vpop.eup %121 }
 0x13b   :  { %v35_v22 = vmul.f32 0.6931472, %v122_v21 }
 0x13d   :  { %v59_v24 = vsub.f32 %v58_v23, %v35_v22 }
 0x13f   :  { %v60_v25 = vmul.f32 1.442695, %v59_v24 }
 0x141   :  { %123 = vpow2.f32 %v60_v25 }
 0x14b   :  { %v124_v26 = vpop.eup %123 }
 0x14c   :  { %v62_v28 = vsub.f32 1.0, %v124_v26 }
 0x14e   :  { %v63_v29 = vmul.f32 %v62_v28, %v62_v28 }
 0x150   :  { %v65_v31 = vmul.f32 %v64_v30, %v63_v29 }
 0x152   :  { %v66_v32 = vmul.f32 %v65_v31, %v59_v24 }
 0x154   :  { %v76_v33 = vsel %vm75_vm3, %v66_v32, 0.0 }
 0x155   :  { %77 = vadd.xlane.f32.xlu1 %v76_v33 }
 0x1e2   :  { %v78_v34 = vpop.xlane.xlu1 %77 }
 0x1e3   :  { %v79_v35 = vrot.slane %v78_v34, 4 }
 0x1e5   :  { %v80_v36 = vadd.f32 %v79_v35, %v78_v34 }
 0x1e7   :  { %v81_v37 = vrot.slane %v80_v36, 2 }
 0x1e9   :  { %v82_v38 = vadd.f32 %v81_v37, %v80_v36 }
 0x1eb   :  { %v83_v39 = vrot.slane %v82_v38, 1 }
 0x1ed   :  { %v84_v40 = vadd.f32 %v83_v39, %v82_v38 }
 0x1ef   :  { %113 = vpush %v84_v40 }
 0x220   :  { %s114_s1 = spop %113 }
 0x221   :  { %v86_v42 = vstv %s114_s1 }
 0x222   :  { %v87_v43 = vadd.f32 %v86_v42, %v74_v41 }
 0x224   :  { %89 = vst.msk [vmem:[#allocation2] sm:$0x1] %vm19_vm1, %v87_v43 }
 0x22b   :  { %v93_v44 = vld [vmem:[#allocation2] sm:$0x1] }
 0x22c   :  { %v95_v45 = vmul.f32 0.125, %v93_v44 }
 0x22e   :  { %96 = vst.msk [vmem:[#allocation3] sm:$0x1] %vm19_vm1, %v95_v45 }
 0x22f   :  { %136 = shalt.err (!%p133_p4)
}
 0x230   :  { %s137_s22 = scalar_lea.hbm %s203_s3, 16 }
 0x231   :  { %p138_p5 = scmp.ne.s32.totalorder %s203_s3, %s137_s22  ;;  %p141_p6 = scmp.lt.u32.totalorder %s137_s22, %s203_s3 }
 0x233   :  { %p143_p7 = pnand %p141_p6, %p138_p5 }
 0x235   :  { %146 = shalt.err (!%p143_p7)
}
 0x236   :  { %106 = dma.vmem_to_hbm [thread:$0]  %s104_s17, 16, %s203_s3, [#allocation4]  }
 0x237   :  { %147 = dma.done.wait [#allocation4], 16  }
 0x238   :  { %148 = vsyncadd [#allocation4], 4294967280 }
 0x239   :  { %110 = vsyncpa [#allocation4], 1 }

</bundles_post_ra>
